<compile_context>
chip_gen: v6e
topology: v6e:2x2x1
jax: 0.10.0
libtpu: 0.0.40
codegen_flags: <defaults>
</compile_context>

<pallas_src>
import functools

import jax
import jax.numpy as jnp
from jax.experimental import pallas as pl
from jax.experimental.pallas import tpu as pltpu

EPS = 1e-5


def weight_fn_kernel(mem_ref, keys_ref, str_ref, out_ref, *, bc):
    # mem_ref:  [bc, M, W]   keys_ref: [bc, H, W]
    # str_ref:  [B,  H]      out_ref:  [bc, H, M]
    mem = mem_ref[...]
    keys = keys_ref[...]

    # Fold the cosine norms into the matmul operands (rsqrt goes to the EUP
    # slot, which is otherwise idle here).
    mem_n = mem * jax.lax.rsqrt(
        jnp.sum(mem * mem, axis=-1, keepdims=True) + EPS)
    keys_n = keys * jax.lax.rsqrt(
        jnp.sum(keys * keys, axis=-1, keepdims=True) + EPS)

    # Batched cosine similarity on the MXU: [bc, H, M].
    act = jnp.einsum("bhw,bmw->bhm", keys_n, mem_n,
                     preferred_element_type=jnp.float32)

    # Softplus(strengths) for this batch chunk (matches torch.nn.Softplus,
    # beta=1, threshold=20).  Strengths stay a tiny VMEM block (vector
    # softplus) rather than SMEM scalars to avoid scalar-transcendental
    # lowering issues.
    if bc == str_ref.shape[0]:
        s = str_ref[...]                                       # [bc, H]
    else:
        s = str_ref[pl.ds(pl.program_id(0) * bc, bc), :]       # [bc, H]
    sp = jnp.where(s > 20.0, s,
                   jnp.log1p(jnp.exp(jnp.minimum(s, 20.0))))
    sharp = act * sp[:, :, None]                               # [bc, H, M]

    # Softmax over the memory axis; EUP reciprocal for the denominator.
    m = jnp.max(sharp, axis=-1, keepdims=True)
    e = jnp.exp(sharp - m)
    denom = jnp.sum(e, axis=-1, keepdims=True)
    out_ref[...] = (e * pl.reciprocal(denom, approx=True)).astype(out_ref.dtype)


def weight_fn(memory, keys, strengths, *, num_chunks=1):
    """Cosine-weighting forward pass.

    num_chunks: number of grid steps the batch is split into.  Use 1 on
    single-TensorCore chips (v5e/v6e); use 2 on v7x so both TCs get work.
    """
    B, M, W = memory.shape
    Bk, H, Wk = keys.shape
    assert Bk == B and Wk == W and strengths.shape == (B, H)
    assert B % num_chunks == 0
    bc = B // num_chunks

    kernel = functools.partial(weight_fn_kernel, bc=bc)

    return pl.pallas_call(
        kernel,
        out_shape=jax.ShapeDtypeStruct((B, H, M), memory.dtype),
        grid_spec=pltpu.PrefetchScalarGridSpec(
            num_scalar_prefetch=0,
            grid=(num_chunks,),
            in_specs=[
                pl.BlockSpec((bc, M, W), lambda c: (c, 0, 0)),
                pl.BlockSpec((bc, H, W), lambda c: (c, 0, 0)),
                # strengths are tiny (8 bytes at defaults); deliver the full
                # [B, H] block each step and slice the chunk in-kernel, which
                # keeps the (8,128) block-divisibility rule trivially satisfied
                # for any chunking.
                pl.BlockSpec((B, H), lambda c: (0, 0)),
            ],
            out_specs=pl.BlockSpec((bc, H, M), lambda c: (c, 0, 0)),
        ),
        compiler_params=pltpu.CompilerParams(
            dimension_semantics=("parallel",),
        ),
    )(memory, keys, strengths)


def weight_fn_reference(memory, keys, strengths):
    # Pure-JAX mirror of the PyTorch forward, for verification.
    dot = jnp.einsum("bhw,bmw->bhm", keys, memory)
    mem_norm = jnp.sqrt(jnp.sum(memory * memory, axis=2, keepdims=True) + EPS)
    key_norm = jnp.sqrt(jnp.sum(keys * keys, axis=2, keepdims=True) + EPS)
    norm = jnp.einsum("bhi,bmi->bhm", key_norm, mem_norm)
    act = dot / (norm + EPS)
    sp = jnp.where(strengths > 20.0, strengths,
                   jnp.log1p(jnp.exp(jnp.minimum(strengths, 20.0))))
    sharp = act * sp[..., None]
    return jax.nn.softmax(sharp, axis=-1)


if __name__ == "__main__":
    # Module config: word_size=32, num_heads=1 (defaults).
    B, M, W, H = 2, 16, 32, 1

    key = jax.random.PRNGKey(0)
    k1, k2, k3 = jax.random.split(key, 3)
    memory = jax.random.normal(k1, (B, M, W), dtype=jnp.float32)
    keys = jax.random.normal(k2, (B, H, W), dtype=jnp.float32)
    strengths = jax.random.normal(k3, (B, H), dtype=jnp.float32)

    out = weight_fn(memory, keys, strengths)   # pass num_chunks=2 on v7x
    out = jax.block_until_ready(out)

    ref = weight_fn_reference(memory, keys, strengths)
    assert out.shape == (B, H, M)
    # Tolerance covers the approximate EUP reciprocal in the softmax and the
    # (tiny) EPS-placement change from folding the norms into the operands.
    assert jnp.allclose(out, ref, atol=1e-3, rtol=1e-3), \
        float(jnp.max(jnp.abs(out - ref)))

    print("KERNEL_OK")
</pallas_src>

<mosaic_0001>
module attributes {stable_mosaic.version = 11 : i64} {
  func.func @weight_fn_kernel(%arg0: i32, %arg1: memref<2x16x32xf32, #tpu.memory_space<vmem>>, %arg2: memref<2x1x32xf32, #tpu.memory_space<vmem>>, %arg3: memref<2x1xf32, #tpu.memory_space<vmem>>, %arg4: memref<2x1x16xf32, #tpu.memory_space<vmem>>) attributes {dimension_semantics = [#tpu.dimension_semantics<parallel>], iteration_bounds = array<i64: 1>, scalar_prefetch = 0 : i64, scratch_operands = 0 : i64, tpu.core_type = #tpu.core_type<tc>, window_params = [{transform_indices = @transform_0, window_bounds = array<i64: 2, 16, 32>}, {transform_indices = @transform_1, window_bounds = array<i64: 2, 1, 32>}, {pipeline_mode = #tpu.pipeline_mode<synchronous>, transform_indices = @transform_2, window_bounds = array<i64: 2, 1>}, {transform_indices = @transform_3, window_bounds = array<i64: 2, 1, 16>}]} {
    %c0 = arith.constant 0 : index
    %c0_0 = arith.constant 0 : index
    %c0_1 = arith.constant 0 : index
    %0 = vector.load %arg1[%c0, %c0_0, %c0_1] : memref<2x16x32xf32, #tpu.memory_space<vmem>>, vector<2x16x32xf32>
    %c0_2 = arith.constant 0 : index
    %c0_3 = arith.constant 0 : index
    %c0_4 = arith.constant 0 : index
    %1 = vector.load %arg2[%c0_2, %c0_3, %c0_4] : memref<2x1x32xf32, #tpu.memory_space<vmem>>, vector<2x1x32xf32>
    %2 = arith.mulf %0, %0 : vector<2x16x32xf32>
    %cst = arith.constant dense<0.000000e+00> : vector<2x16xf32>
    %3 = vector.multi_reduction <add>, %2, %cst [2] : vector<2x16x32xf32> to vector<2x16xf32>
    %4 = vector.shape_cast %3 : vector<2x16xf32> to vector<2x16x1xf32>
    %cst_5 = arith.constant 9.99999974E-6 : f32
    %5 = vector.broadcast %cst_5 : f32 to vector<2x16x1xf32>
    %6 = arith.addf %4, %5 : vector<2x16x1xf32>
    %7 = math.rsqrt %6 : vector<2x16x1xf32>
    %8 = vector.broadcast %7 : vector<2x16x1xf32> to vector<2x16x32xf32>
    %9 = arith.mulf %0, %8 : vector<2x16x32xf32>
    %10 = arith.mulf %1, %1 : vector<2x1x32xf32>
    %cst_6 = arith.constant dense<0.000000e+00> : vector<2x1xf32>
    %11 = vector.multi_reduction <add>, %10, %cst_6 [2] : vector<2x1x32xf32> to vector<2x1xf32>
    %12 = vector.shape_cast %11 : vector<2x1xf32> to vector<2x1x1xf32>
    %cst_7 = arith.constant 9.99999974E-6 : f32
    %13 = vector.broadcast %cst_7 : f32 to vector<2x1x1xf32>
    %14 = arith.addf %12, %13 : vector<2x1x1xf32>
    %15 = math.rsqrt %14 : vector<2x1x1xf32>
    %16 = vector.broadcast %15 : vector<2x1x1xf32> to vector<2x1x32xf32>
    %17 = arith.mulf %1, %16 : vector<2x1x32xf32>
    "tpu.trace_start"() <{level = 10 : i32, message = "bhw,bmw->bhm"}> : () -> ()
    %cst_8 = arith.constant dense<0.000000e+00> : vector<2x1x16xf32>
    %18 = tpu.matmul %17, %9, %cst_8 {dimension_numbers = #tpu.dot_dimension_numbers<[2], [2], [1], [1], [0, 0, 0, 1, 1, 1], [0], [0]>} : vector<2x1x32xf32>, vector<2x16x32xf32>, vector<2x1x16xf32> -> vector<2x1x16xf32>
    "tpu.trace_stop"() : () -> ()
    %c0_9 = arith.constant 0 : index
    %c0_10 = arith.constant 0 : index
    %19 = vector.load %arg3[%c0_9, %c0_10] : memref<2x1xf32, #tpu.memory_space<vmem>>, vector<2x1xf32>
    %cst_11 = arith.constant 2.000000e+01 : f32
    %20 = vector.broadcast %cst_11 : f32 to vector<2x1xf32>
    %21 = arith.cmpf ogt, %19, %20 : vector<2x1xf32>
    %cst_12 = arith.constant 2.000000e+01 : f32
    %22 = vector.broadcast %cst_12 : f32 to vector<2x1xf32>
    %23 = arith.minimumf %19, %22 : vector<2x1xf32>
    %24 = math.exp %23 : vector<2x1xf32>
    %25 = math.log1p %24 : vector<2x1xf32>
    %26 = arith.select %21, %19, %25 : vector<2x1xi1>, vector<2x1xf32>
    %27 = vector.shape_cast %26 : vector<2x1xf32> to vector<2x1x1xf32>
    %28 = vector.broadcast %27 : vector<2x1x1xf32> to vector<2x1x16xf32>
    %29 = arith.mulf %18, %28 : vector<2x1x16xf32>
    %cst_13 = arith.constant dense<0xFF800000> : vector<2x1xf32>
    %30 = vector.multi_reduction <maximumf>, %29, %cst_13 [2] : vector<2x1x16xf32> to vector<2x1xf32>
    %31 = vector.shape_cast %30 : vector<2x1xf32> to vector<2x1x1xf32>
    %32 = vector.broadcast %31 : vector<2x1x1xf32> to vector<2x1x16xf32>
    %33 = arith.subf %29, %32 : vector<2x1x16xf32>
    %34 = math.exp %33 : vector<2x1x16xf32>
    %cst_14 = arith.constant dense<0.000000e+00> : vector<2x1xf32>
    %35 = vector.multi_reduction <add>, %34, %cst_14 [2] : vector<2x1x16xf32> to vector<2x1xf32>
    %36 = vector.shape_cast %35 : vector<2x1xf32> to vector<2x1x1xf32>
    %37 = tpu.reciprocal %36 {approx = true} : vector<2x1x1xf32> -> vector<2x1x1xf32>
    %38 = vector.broadcast %37 : vector<2x1x1xf32> to vector<2x1x16xf32>
    %39 = arith.mulf %34, %38 : vector<2x1x16xf32>
    %c0_15 = arith.constant 0 : index
    %c0_16 = arith.constant 0 : index
    %c0_17 = arith.constant 0 : index
    %40 = vector.load %arg4[%c0_15, %c0_16, %c0_17] : memref<2x1x16xf32, #tpu.memory_space<vmem>>, vector<2x1x16xf32>
    tpu.vector_store %arg4[%c0_15, %c0_16, %c0_17], %39 {strides = array<i32>} : memref<2x1x16xf32, #tpu.memory_space<vmem>>, vector<2x1x16xf32>,
    return
  }
  func.func @transform_0(%arg0: i32) -> (i32, i32, i32) {
    %c0_i32 = arith.constant 0 : i32
    %c0_i32_0 = arith.constant 0 : i32
    %c0_i32_1 = arith.constant 0 : i32
    return %arg0, %c0_i32, %c0_i32_0 : i32, i32, i32
  }
  func.func @transform_1(%arg0: i32) -> (i32, i32, i32) {
    %c0_i32 = arith.constant 0 : i32
    %c0_i32_0 = arith.constant 0 : i32
    %c0_i32_1 = arith.constant 0 : i32
    return %arg0, %c0_i32, %c0_i32_0 : i32, i32, i32
  }
  func.func @transform_2(%arg0: i32) -> (i32, i32) {
    %c0_i32 = arith.constant 0 : i32
    %c0_i32_0 = arith.constant 0 : i32
    %c0_i32_1 = arith.constant 0 : i32
    return %c0_i32, %c0_i32_0 : i32, i32
  }
  func.func @transform_3(%arg0: i32) -> (i32, i32, i32) {
    %c0_i32 = arith.constant 0 : i32
    %c0_i32_0 = arith.constant 0 : i32
    %c0_i32_1 = arith.constant 0 : i32
    return %arg0, %c0_i32, %c0_i32_0 : i32, i32, i32
  }
}

</mosaic_0001>

<bundles_post_ra>
// kernel: tpu_custom_call.1
= control target key start
LH: loop header
LB: loop body
LE: loop exit
PB: predicated region body
PF: predicated region fallthrough
CT: control target
= control target key end

     0   :  { %8 = vsyncpa [#allocation3], 0  ;;  %s538_s0 = inlined_call_operand.hbm [shape: f32[2,16,32], index: 0, kind: input, shape index: {}]   ;;  %s539_s1 = inlined_call_operand.vmem [shape: f32[2,1,32], index: 1, kind: input, shape index: {}]   ;;  %s540_s2 = inlined_call_operand.vmem [shape: f32[2,1], index: 2, kind: input, shape index: {}]   ;;  %s541_s3 = inlined_call_operand.hbm [shape: f32[2,1,16], index: 3, kind: output, shape index: {}]  }
   0x1   :  { %9 = vsyncpa [#allocation4], 0  ;;  %s441_s12 = smov [#allocation2]  }
   0x2   :  { %s15_s13 = sshll.u32 %s441_s12, 4  ;;  %s16_s13 = int_to_ptr.vmem [resolvable:$true] %s15_s13 }
   0x3   :  { %s405_s14 = scalar_lea.vmem %s16_s13, 512  ;;  %p410_p1 = scmp.lt.s32.totalorder %s16_s13, %s16_s13 }
   0x4   :  { %p406_p0 = scmp.ne.s32.totalorder %s16_s13, %s405_s14  ;;  %p411_p2 = scmp.lt.s32.totalorder %s405_s14, %s405_s14 }
   0x6   :  { %p412_p3 = por %p411_p2, %p410_p1 }
   0x8   :  { %p413_p4 = pnand %p412_p3, %p406_p0 }
   0xa   :  { %416 = shalt.err (!%p413_p4)
}
   0xb   :  { %s442_s15 = smov 128   ;;  %s443_s16 = smov 8  }
   0xc   :  { %21 = dma.hbm_to_vmem [thread:$0]  %s538_s0, 512, %s16_s13, [#allocation3], %s442_s15, %s442_s15, %s443_s16  }
   0xd   :  { %437 = dma.done.wait [#allocation3], 512  }
   0xe   :  { %438 = vsyncadd [#allocation3], 4294966784  ;;  %v474_v0 = vld [vmem:[#allocation2 + $0x8] sm:$0xff]  ;;  %vm39_vm0 = vcmask 261120   ;;  %v476_v1 = vld [vmem:[#allocation2] sm:$0xff]  ;;  %vm66_vm1 = vcmask 253952   ;;  %v256_v28 = vlaneseq }
   0xf   :  { %v478_v2 = vld [vmem:[#allocation2 + $0x18] sm:$0xff]  ;;  %v36_v3 = vmul.f32 %v474_v0, %v474_v0  ;;  %v35_v4 = vmul.f32 %v476_v1, %v476_v1  ;;  %v486_v6 = vld [vmem:[#allocation2 + $0x10] sm:$0xff]  ;;  %v493_v8 = vld [vmem:[%s539_s1] sm:$0x1]  ;;  %v444_v18 = vmov 0.0   ;;  %vm445_vm2 = vmmov 0  }
  0x10   :  { %v38_v5 = vmul.f32 %v478_v2, %v478_v2  ;;  %v37_v7 = vmul.f32 %v486_v6, %v486_v6  ;;  %v498_v9 = vld [vmem:[%s539_s1 + $0x1] sm:$0x1]  ;;  %v64_v14 = vmul.f32 %v493_v8, %v493_v8  ;;  %347 = vmatprep.subr.mxu0 %v444_v18  ;;  %354 = vmatprep.subr.mxu1 %v444_v18  ;;  %v446_v20 = vmov 0  }
  0x11   :  { %v43_v10 = vsel %vm39_vm0, %v36_v3, 0.0  ;;  %v40_v11 = vsel %vm39_vm0, %v35_v4, 0.0  ;;  %v65_v15 = vmul.f32 %v498_v9, %v498_v9  ;;  %351 = vmatprep.mubr.msk.f32.mxu0 %vm445_vm2, %v444_v18  ;;  %358 = vmatprep.mubr.msk.f32.mxu1 %vm445_vm2, %v444_v18  ;;  %v237_v19 = vld [vmem:[%s540_s2] sm:$0x3]  ;;  %v447_v26 = vmov 1966171168  }
  0x12   :  { %44 = vadd.xlane.f32.xlu0 %v43_v10  ;;  %41 = vadd.xlane.f32.xlu1 %v40_v11  ;;  %v49_v12 = vsel %vm39_vm0, %v38_v5, 0.0  ;;  %v46_v13 = vsel %vm39_vm0, %v37_v7, 0.0  ;;  %v67_v16 = vsel %vm66_vm1, %v64_v14, 0.0  ;;  %v239_v21 = vmin.f32 %v237_v19, 20.0  ;;  %s448_s2 = smov [#allocation5]  }
  0x13   :  { %v70_v17 = vsel %vm66_vm1, %v65_v15, 0.0  ;;  %371 = vset.pattern.permute.xlu0 %v446_v20  ;;  %372 = vset.pattern.permute.xlu1 %v446_v20  ;;  %v254_v27 = vunpack.c.l.s4 %v447_v26  ;;  %v257_v32 = vshrl.u32 %v256_v28, 7  ;;  %vm238_vm4 = vcmp.gt.f32.partialorder %v237_v19, 20.0  ;;  %s323_s23 = sshll.u32 %s448_s2, 4  ;;  %s324_s23 = int_to_ptr.vmem [resolvable:$true] %s323_s23 }
  0x14   :  { %v240_v22 = vmul.f32 1.442695, %v239_v21  ;;  %vm293_vm5 = vcmask 122880   ;;  %s417_s24 = scalar_lea.vmem %s324_s23, 32  ;;  %p422_p6 = scmp.lt.s32.totalorder %s324_s23, %s324_s23 }
  0x15   :  { %v255_v31 = vunpack.c.0.s8 %v254_v27  ;;  %p418_p5 = scmp.ne.s32.totalorder %s324_s23, %s417_s24  ;;  %p423_p7 = scmp.lt.s32.totalorder %s417_s24, %s417_s24 }
  0x16   :  { %50 = vadd.xlane.f32.xlu0 %v49_v12  ;;  %47 = vadd.xlane.f32.xlu1 %v46_v13  ;;  %373 = vpow2.f32 %v240_v22 }
  0x17   :  { %v258_v36 = vsub.s32 %v255_v31, %v257_v32  ;;  %p424_p8 = por %p423_p7, %p422_p6 }
  0x19   :  { %p425_p9 = pnand %p424_p8, %p418_p5 }
  0x1a   :  { %68 = vadd.xlane.f32.xlu0 %v67_v16  ;;  %71 = vadd.xlane.f32.xlu1 %v70_v17 }
  0x23   :  { %v374_v23 = vpop.eup %373 }
  0x24   :  { %v242_v24 = vadd.f32 1.0, %v374_v23  ;;  %v245_v25 = vmul.f32 -0.5, %v374_v23  ;;  %v248_v30 = vand.u32 2147483647, %v374_v23 }
  0x26   :  { %375 = vlog2.f32 %v242_v24  ;;  %v246_v29 = vadd.f32 1.0, %v245_v25  ;;  %vm249_vm3 = vcmp.lt.f32.partialorder %v248_v30, 0.0004427343 }
  0x28   :  { %v247_v33 = vmul.f32 %v374_v23, %v246_v29 }
  0x33   :  { %v376_v34 = vpop.eup %375 }
  0x34   :  { %v244_v35 = vmul.f32 0.6931472, %v376_v34 }
  0x36   :  { %v250_v37 = vsel %vm249_vm3, %v247_v33, %v244_v35 }
  0x37   :  { %v251_v38 = vsel %vm238_vm4, %v237_v19, %v250_v37 }
  0x38   :  { %v259_v39 = vrot.slane %v251_v38, %v258_v36 }
  0x3a   :  { %v267_v40 = vrot.slane %v259_v39, %v258_v36  ;;  %v260_v41 = vcombine.high %v259_v39, %v259_v39 }
  0x3c   :  { %276 = vperm.xlu0 %371, %v267_v40   ;;  %v274_v42 = vrot.slane %v260_v41, %v258_v36 }
  0x3e   :  { %284 = vperm.xlu1 %372, %v274_v42  }
  0x9b   :  { %v45_v43 = vpop.xlane.xlu0 %44  ;;  %v42_v44 = vpop.xlane.xlu1 %41 }
  0x9c   :  { %v53_v45 = vadd.f32 1e-05, %v45_v43  ;;  %v52_v46 = vadd.f32 1e-05, %v42_v44 }
  0x9e   :  { %377 = vrsqrt.f32 %v53_v45 }
  0x9f   :  { %379 = vrsqrt.f32 %v52_v46  ;;  %v51_v47 = vpop.xlane.xlu0 %50  ;;  %v48_v48 = vpop.xlane.xlu1 %47 }
  0xa0   :  { %v55_v49 = vadd.f32 1e-05, %v51_v47  ;;  %v54_v50 = vadd.f32 1e-05, %v48_v48 }
  0xa2   :  { %381 = vrsqrt.f32 %v55_v49 }
  0xa3   :  { %383 = vrsqrt.f32 %v54_v50  ;;  %v69_v51 = vpop.xlane.xlu0 %68  ;;  %v72_v52 = vpop.xlane.xlu1 %71 }
  0xa4   :  { %v73_v53 = vadd.f32 1e-05, %v69_v51  ;;  %v74_v54 = vadd.f32 1e-05, %v72_v52 }
  0xa6   :  { %385 = vrsqrt.f32 %v73_v53 }
  0xa7   :  { %387 = vrsqrt.f32 %v74_v54 }
  0xab   :  { %v378_v55 = vpop.eup %377 }
  0xac   :  { %v380_v56 = vpop.eup %379  ;;  %v61_v57 = vmul.f32 %v378_v55, %v474_v0 }
  0xad   :  { %v60_v58 = vmul.f32 %v380_v56, %v476_v1 }
  0xae   :  { %348 = vmatpush3.xpose.msk.msra.mxu0 %vm39_vm0, %v61_v57 }
  0xaf   :  { %v382_v59 = vpop.eup %381  ;;  %349 = vmatprep.subr.mxu0 %v444_v18 }
  0xb0   :  { %v384_v60 = vpop.eup %383  ;;  %v63_v61 = vmul.f32 %v382_v59, %v478_v2  ;;  %v281_v2 = vsub.s32 0, %v257_v32 }
  0xb1   :  { %v62_v62 = vmul.f32 %v384_v60, %v486_v6 }
  0xb2   :  { %350 = vmatpush3.xpose.msk.msra.mxu0 %vm39_vm0, %v60_v58  ;;  %355 = vmatpush3.xpose.msk.msra.mxu1 %vm39_vm0, %v63_v61 }
  0xb3   :  { %v386_v63 = vpop.eup %385  ;;  %356 = vmatprep.subr.mxu1 %v444_v18 }
  0xb4   :  { %v388_v0 = vpop.eup %387  ;;  %v77_v3 = vmul.f32 %v386_v63, %v493_v8 }
  0xb5   :  { %v78_v1 = vmul.f32 %v388_v0, %v498_v9 }
  0xb6   :  { %352 = vmatmul.mubr.msk.f32.vlgmr.msra.gmra.mxu0 %vm39_vm0, %v77_v3  ;;  %357 = vmatpush3.xpose.msk.msra.mxu1 %vm39_vm0, %v62_v62 }
  0xb7   :  { %v277_v4 = vpop.permute.xlu0 %276 }
  0xb8   :  { %v282_v5 = vrot.slane %v277_v4, %v281_v2 }
  0xb9   :  { %359 = vmatmul.mubr.msk.f32.vlgmr.msra.gmra.mxu1 %vm39_vm0, %v78_v1  ;;  %v285_v7 = vpop.permute.xlu1 %284 }
  0xba   :  { %v290_v6 = vrot.slane %v285_v7, %v281_v2 }
 0x176   :  { %v154_v10 = vpop.f32.mrf.mxu0 }
 0x177   :  { %v291_v11 = vmul.f32 %v282_v5, %v154_v10 }
 0x178   :  { %v353_v12 = vpop.f32.mrf.mxu0 }
 0x179   :  { %v233_v13 = vpop.f32.mrf.mxu1  ;;  %v294_v8 = vsel %vm293_vm5, %v291_v11, -inf }
 0x17a   :  { %v292_v14 = vmul.f32 %v290_v6, %v233_v13  ;;  %295 = vmax.xlane.f32.xlu1 %v294_v8 }
 0x17b   :  { %v360_v9 = vpop.f32.mrf.mxu1 }
 0x17c   :  { %v297_v15 = vsel %vm293_vm5, %v292_v14, -inf }
 0x17d   :  { %298 = vmax.xlane.f32.xlu0 %v297_v15 }
 0x203   :  { %v296_v16 = vpop.xlane.xlu1 %295 }
 0x204   :  { %v300_v17 = vsub.f32 %v291_v11, %v296_v16 }
 0x206   :  { %v302_v18 = vmul.f32 1.442695, %v300_v17  ;;  %v299_v19 = vpop.xlane.xlu0 %298 }
 0x207   :  { %v301_v20 = vsub.f32 %v292_v14, %v299_v19 }
 0x208   :  { %389 = vpow2.f32 %v302_v18 }
 0x209   :  { %v304_v21 = vmul.f32 1.442695, %v301_v20 }
 0x20b   :  { %391 = vpow2.f32 %v304_v21 }
 0x215   :  { %v390_v22 = vpop.eup %389 }
 0x216   :  { %v306_v23 = vsel %vm293_vm5, %v390_v22, 0.0 }
 0x217   :  { %307 = vadd.xlane.f32.xlu1 %v306_v23 }
 0x218   :  { %v392_v24 = vpop.eup %391 }
 0x219   :  { %v309_v25 = vsel %vm293_vm5, %v392_v24, 0.0 }
 0x21b   :  { %310 = vadd.xlane.f32.xlu1 %v309_v25 }
 0x2a0   :  { %v308_v26 = vpop.xlane.xlu1 %307 }
 0x2a1   :  { %393 = vrcp.f32 %v308_v26 }
 0x2a4   :  { %v311_v27 = vpop.xlane.xlu1 %310 }
 0x2a5   :  { %395 = vrcp.f32 %v311_v27 }
 0x2ae   :  { %v394_v28 = vpop.eup %393 }
 0x2af   :  { %v314_v29 = vmul.f32 %v394_v28, %v390_v22 }
 0x2b1   :  { %316 = vst.msk [vmem:[#allocation5] sm:$0x1] %vm293_vm5, %v314_v29 }
 0x2b2   :  { %v396_v30 = vpop.eup %395 }
 0x2b3   :  { %v315_v31 = vmul.f32 %v396_v30, %v392_v24 }
 0x2b5   :  { %317 = vst.msk [vmem:[#allocation5 + $0x1] sm:$0x1] %vm293_vm5, %v315_v31 }
 0x2b6   :  { %428 = shalt.err (!%p425_p9)
}
 0x2b7   :  { %s449_s25 = smov 16   ;;  %s450_s26 = smov 1  }
 0x2b8   :  { %329 = dma.vmem_to_hbm [thread:$0]  %s324_s23, 32, %s541_s3, [#allocation4], %s449_s25, %s449_s25, %s450_s26  }
 0x2b9   :  { %439 = dma.done.wait [#allocation4], 32  }
 0x2ba   :  { %440 = vsyncadd [#allocation4], 4294967264 }
 0x2bb   :  { %333 = vsyncpa [#allocation3], 1 }
 0x2bc   :  { %334 = vsyncpa [#allocation4], 1 }

</bundles_post_ra>
